<compile_context>
chip_gen: v6e
topology: v6e:2x2x1
jax: 0.10.0
libtpu: 0.0.40
codegen_flags: <defaults>
</compile_context>

<pallas_src>
import jax
import jax.numpy as jnp
from jax.experimental import pallas as pl
from jax.experimental.pallas import tpu as pltpu

_EPS = 1e-5


def gsrph_kernel(x_ref, wt_ref, g_ref, be_ref, o_ref):
    # x_ref: (B, F) bf16, wt_ref: (F, U) bf16, g_ref/be_ref: (1, U) f32,
    # o_ref: (B, U) f32.
    y = jnp.dot(x_ref[...], wt_ref[...],
                preferred_element_type=jnp.float32)            # (B, U) f32, MXU

    # BatchNorm1d (training-mode batch statistics over the batch axis),
    # single pass: sum and sum-of-squares together.
    inv_b = 1.0 / y.shape[0]
    s1 = jnp.sum(y, axis=0, keepdims=True)                     # (1, U)
    s2 = jnp.sum(y * y, axis=0, keepdims=True)                 # (1, U)
    mean = s1 * inv_b
    var = s2 * inv_b - mean * mean                             # biased variance
    inv = jax.lax.rsqrt(var + _EPS)                            # EUP

    scale = g_ref[...] * inv
    shift = be_ref[...] - mean * scale
    o_ref[...] = jnp.maximum(y * scale + shift, 0.0)           # BN + ReLU, f32


def gsrph_forward(x, p):
    """x: (B, 1, in_features) -> (B, units)."""
    B = x.shape[0]
    x2 = x.reshape(B, -1).astype(jnp.bfloat16)                 # .squeeze(1) + bf16 operand
    U = p["wt"].shape[1]
    vmem = pl.BlockSpec(memory_space=pltpu.MemorySpace.VMEM)
    return pl.pallas_call(
        gsrph_kernel,
        out_shape=jax.ShapeDtypeStruct((B, U), jnp.float32),
        in_specs=[vmem] * 4,
        out_specs=vmem,
    )(x2, p["wt"], p["gamma"], p["beta"])


def make_phm_linear_params(key, n, in_f, out_f):
    """PHMLinear weight: W = sum_i kron(A_i, S_i), A:(n,n,n), S:(n,out/n,in/n)."""
    ka, ks, kb = jax.random.split(key, 3)
    A = jax.random.normal(ka, (n, n, n), jnp.float32) * 0.5
    S = jax.random.normal(ks, (n, out_f // n, in_f // n), jnp.float32)
    S = S * (1.0 / float(in_f) ** 0.5)
    # kron over the (out, in) dims, summed over the n hypercomplex components.
    W = jnp.einsum("ipr,iqs->pqrs", A, S).reshape(out_f, in_f)  # (out, in)
    b = jax.random.normal(kb, (out_f,), jnp.float32) * 0.01
    return W, b


def ref_forward(x, p):
    """Pure-JAX reference of the same math (bias kept; BN cancels it)."""
    B = x.shape[0]
    x2 = x.reshape(B, -1)
    y = jnp.dot(x2.astype(jnp.bfloat16), p["W"].T.astype(jnp.bfloat16),
                preferred_element_type=jnp.float32) + p["b"][None, :]
    m = y.mean(axis=0, keepdims=True)
    v = ((y - m) ** 2).mean(axis=0, keepdims=True)
    yn = (y - m) * jax.lax.rsqrt(v + _EPS) * p["gamma"] + p["beta"]
    return jnp.maximum(yn, 0.0)


if __name__ == "__main__":
    # GSRPHBase: PHMLinear(n, 1280, units) -> BatchNorm1d(units) -> ReLU.
    n, in_f, units = 2, 1280, 130
    B = 8

    key = jax.random.PRNGKey(0)
    kw, kx = jax.random.split(key)
    W, b = make_phm_linear_params(kw, n, in_f, units)

    params = dict(
        W=W, b=b,
        wt=W.T.astype(jnp.bfloat16),                  # pre-packed (in, out) MXU operand
        gamma=jnp.ones((1, units), jnp.float32),      # fresh nn.BatchNorm1d affine params
        beta=jnp.zeros((1, units), jnp.float32),
    )

    x = jax.random.normal(kx, (B, 1, in_f), jnp.float32)   # GSR modality input

    out = jax.block_until_ready(gsrph_forward(x, params))
    ref = ref_forward(x, params)

    assert out.shape == (B, units), out.shape
    err = float(jnp.max(jnp.abs(out - ref)))
    assert jnp.allclose(out, ref, atol=1e-3, rtol=1e-3), ("mismatch vs reference", err)

    print("KERNEL_OK")
</pallas_src>

<mosaic_0001>
module attributes {stable_mosaic.version = 11 : i64} {
  func.func @gsrph_kernel(%arg0: memref<8x1280xbf16, #tpu.memory_space<vmem>>, %arg1: memref<1280x130xbf16, #tpu.memory_space<vmem>>, %arg2: memref<1x130xf32, #tpu.memory_space<vmem>>, %arg3: memref<1x130xf32, #tpu.memory_space<vmem>>, %arg4: memref<8x130xf32, #tpu.memory_space<vmem>>) attributes {dimension_semantics = [], scalar_prefetch = 0 : i64, scratch_operands = 0 : i64, tpu.core_type = #tpu.core_type<tc>} {
    %c0 = arith.constant 0 : index
    %c0_0 = arith.constant 0 : index
    %0 = vector.load %arg0[%c0, %c0_0] : memref<8x1280xbf16, #tpu.memory_space<vmem>>, vector<8x1280xbf16>
    %c0_1 = arith.constant 0 : index
    %c0_2 = arith.constant 0 : index
    %1 = vector.load %arg1[%c0_1, %c0_2] : memref<1280x130xbf16, #tpu.memory_space<vmem>>, vector<1280x130xbf16>
    %cst = arith.constant dense<0.000000e+00> : vector<8x130xf32>
    %2 = tpu.matmul %0, %1, %cst {dimension_numbers = #tpu.dot_dimension_numbers<[1], [0], [0], [1], [0, 0, 1, 1], [], []>} : vector<8x1280xbf16>, vector<1280x130xbf16>, vector<8x130xf32> -> vector<8x130xf32>
    %cst_3 = arith.constant dense<0.000000e+00> : vector<130xf32>
    %3 = vector.multi_reduction <add>, %2, %cst_3 [0] : vector<8x130xf32> to vector<130xf32>
    %4 = vector.shape_cast %3 : vector<130xf32> to vector<1x130xf32>
    %5 = arith.mulf %2, %2 : vector<8x130xf32>
    %cst_4 = arith.constant dense<0.000000e+00> : vector<130xf32>
    %6 = vector.multi_reduction <add>, %5, %cst_4 [0] : vector<8x130xf32> to vector<130xf32>
    %7 = vector.shape_cast %6 : vector<130xf32> to vector<1x130xf32>
    %cst_5 = arith.constant 1.250000e-01 : f32
    %8 = vector.broadcast %cst_5 : f32 to vector<1x130xf32>
    %9 = arith.mulf %4, %8 : vector<1x130xf32>
    %cst_6 = arith.constant 1.250000e-01 : f32
    %10 = vector.broadcast %cst_6 : f32 to vector<1x130xf32>
    %11 = arith.mulf %7, %10 : vector<1x130xf32>
    %12 = arith.mulf %9, %9 : vector<1x130xf32>
    %13 = arith.subf %11, %12 : vector<1x130xf32>
    %cst_7 = arith.constant 9.99999974E-6 : f32
    %14 = vector.broadcast %cst_7 : f32 to vector<1x130xf32>
    %15 = arith.addf %13, %14 : vector<1x130xf32>
    %16 = math.rsqrt %15 : vector<1x130xf32>
    %c0_8 = arith.constant 0 : index
    %c0_9 = arith.constant 0 : index
    %17 = vector.load %arg2[%c0_8, %c0_9] : memref<1x130xf32, #tpu.memory_space<vmem>>, vector<1x130xf32>
    %18 = arith.mulf %17, %16 : vector<1x130xf32>
    %c0_10 = arith.constant 0 : index
    %c0_11 = arith.constant 0 : index
    %19 = vector.load %arg3[%c0_10, %c0_11] : memref<1x130xf32, #tpu.memory_space<vmem>>, vector<1x130xf32>
    %20 = arith.mulf %9, %18 : vector<1x130xf32>
    %21 = arith.subf %19, %20 : vector<1x130xf32>
    %22 = vector.broadcast %18 : vector<1x130xf32> to vector<8x130xf32>
    %23 = arith.mulf %2, %22 : vector<8x130xf32>
    %24 = vector.broadcast %21 : vector<1x130xf32> to vector<8x130xf32>
    %25 = arith.addf %23, %24 : vector<8x130xf32>
    %cst_12 = arith.constant 0.000000e+00 : f32
    %26 = vector.broadcast %cst_12 : f32 to vector<8x130xf32>
    %27 = arith.maximumf %25, %26 : vector<8x130xf32>
    %c0_13 = arith.constant 0 : index
    %c0_14 = arith.constant 0 : index
    %28 = vector.load %arg4[%c0_13, %c0_14] : memref<8x130xf32, #tpu.memory_space<vmem>>, vector<8x130xf32>
    tpu.vector_store %arg4[%c0_13, %c0_14], %27 {strides = array<i32>} : memref<8x130xf32, #tpu.memory_space<vmem>>, vector<8x130xf32>,
    return
  }
}

</mosaic_0001>

<bundles_post_ra>
// kernel: tpu_custom_call.1
= control target key start
LH: loop header
LB: loop body
LE: loop exit
PB: predicated region body
PF: predicated region fallthrough
CT: control target
= control target key end

     0   :  { %s2357_s0 = inlined_call_operand.vmem [shape: bf16[8,1280], index: 0, kind: input, shape index: {}]   ;;  %s2358_s1 = inlined_call_operand.vmem [shape: bf16[1280,130], index: 1, kind: input, shape index: {}]   ;;  %s2359_s2 = inlined_call_operand.vmem [shape: f32[1,130], index: 2, kind: input, shape index: {}]   ;;  %s2360_s3 = inlined_call_operand.vmem [shape: f32[1,130], index: 3, kind: input, shape index: {}]   ;;  %s2361_s4 = inlined_call_operand.hbm [shape: f32[8,130], index: 4, kind: output, shape index: {}]  }
   0x1   :  { %v1522_v0 = vld [vmem:[%s2358_s1 + $0x74] ss:$8 sps:$4 sm:$0xff]   ;;  %v1526_v2 = vld [vmem:[%s2358_s1 + $0x70] ss:$8 sps:$4 sm:$0xff]   ;;  %v1528_v4 = vld [vmem:[%s2358_s1 + $0x64] ss:$8 sps:$4 sm:$0xff]  }
   0x2   :  { %v1524_v1 = vld [vmem:[%s2358_s1 + $0x174] ss:$8 sps:$4 sm:$0xff]   ;;  %1018 = vmatprep.subr.bf16.mxu0 %v1522_v0  ;;  %v1527_v3 = vld [vmem:[%s2358_s1 + $0x170] ss:$8 sps:$4 sm:$0xff]   ;;  %v1530_v5 = vld [vmem:[%s2358_s1 + $0x164] ss:$8 sps:$4 sm:$0xff]  }
   0x3   :  { %1059 = vmatprep.subr.bf16.mxu1 %v1524_v1  ;;  %1019 = vmatpush1.bf16.msra.mxu0 %v1526_v2  ;;  %v1532_v6 = vld [vmem:[%s2358_s1 + $0x60] ss:$8 sps:$4 sm:$0xff]   ;;  %v1534_v8 = vld [vmem:[%s2358_s1 + $0x54] ss:$8 sps:$4 sm:$0xff]   ;;  %v1538_v10 = vld [vmem:[%s2358_s1 + $0x50] ss:$8 sps:$4 sm:$0xff]  }
   0x4   :  { %1060 = vmatpush1.bf16.msra.mxu1 %v1527_v3  ;;  %1020 = vmatprep.subr.bf16.mxu0 %v1528_v4  ;;  %v1533_v7 = vld [vmem:[%s2358_s1 + $0x160] ss:$8 sps:$4 sm:$0xff]   ;;  %v1536_v9 = vld [vmem:[%s2358_s1 + $0x154] ss:$8 sps:$4 sm:$0xff]   ;;  %v1539_v11 = vld [vmem:[%s2358_s1 + $0x150] ss:$8 sps:$4 sm:$0xff]  }
   0x5   :  { %1061 = vmatprep.subr.bf16.mxu1 %v1530_v5  ;;  %v1540_v12 = vld [vmem:[%s2358_s1 + $0x44] ss:$8 sps:$4 sm:$0xff]   ;;  %v1544_v14 = vld [vmem:[%s2358_s1 + $0x40] ss:$8 sps:$4 sm:$0xff]   ;;  %v1546_v16 = vld [vmem:[%s2358_s1 + $0x34] ss:$8 sps:$4 sm:$0xff]  }
   0x6   :  { %v1542_v13 = vld [vmem:[%s2358_s1 + $0x144] ss:$8 sps:$4 sm:$0xff]   ;;  %v1545_v15 = vld [vmem:[%s2358_s1 + $0x140] ss:$8 sps:$4 sm:$0xff]   ;;  %v1548_v17 = vld [vmem:[%s2358_s1 + $0x134] ss:$8 sps:$4 sm:$0xff]  }
   0x7   :  { %1021 = vmatpush1.bf16.msra.mxu0 %v1532_v6  ;;  %v1550_v18 = vld [vmem:[%s2358_s1 + $0x30] ss:$8 sps:$4 sm:$0xff]   ;;  %v1552_v20 = vld [vmem:[%s2358_s1 + $0x24] ss:$8 sps:$4 sm:$0xff]   ;;  %v1556_v22 = vld [vmem:[%s2358_s1 + $0x20] ss:$8 sps:$4 sm:$0xff]  }
   0x8   :  { %1062 = vmatpush1.bf16.msra.mxu1 %v1533_v7  ;;  %1022 = vmatprep.subr.bf16.mxu0 %v1534_v8  ;;  %v1551_v19 = vld [vmem:[%s2358_s1 + $0x130] ss:$8 sps:$4 sm:$0xff]   ;;  %v1554_v21 = vld [vmem:[%s2358_s1 + $0x124] ss:$8 sps:$4 sm:$0xff]   ;;  %v1557_v23 = vld [vmem:[%s2358_s1 + $0x120] ss:$8 sps:$4 sm:$0xff]  }
   0x9   :  { %1063 = vmatprep.subr.bf16.mxu1 %v1536_v9  ;;  %v1558_v24 = vld [vmem:[%s2358_s1 + $0x14] ss:$8 sps:$4 sm:$0xff]   ;;  %v1562_v26 = vld [vmem:[%s2358_s1 + $0x10] ss:$8 sps:$4 sm:$0xff]   ;;  %v1564_v28 = vld [vmem:[%s2358_s1 + $0x4] ss:$8 sps:$4 sm:$0xff]  }
   0xa   :  { %v1560_v25 = vld [vmem:[%s2358_s1 + $0x114] ss:$8 sps:$4 sm:$0xff]   ;;  %v1563_v27 = vld [vmem:[%s2358_s1 + $0x110] ss:$8 sps:$4 sm:$0xff]   ;;  %v1566_v29 = vld [vmem:[%s2358_s1 + $0x104] ss:$8 sps:$4 sm:$0xff]  }
   0xb   :  { %1023 = vmatpush1.bf16.msra.mxu0 %v1538_v10  ;;  %v1568_v30 = vld [vmem:[%s2358_s1] ss:$8 sps:$4 sm:$0xff]   ;;  %v1570_v32 = vld [vmem:[%s2358_s1 + $0xf4] ss:$8 sps:$4 sm:$0xff]   ;;  %v1574_v34 = vld [vmem:[%s2358_s1 + $0xf0] ss:$8 sps:$4 sm:$0xff]  }
   0xc   :  { %1064 = vmatpush1.bf16.msra.mxu1 %v1539_v11  ;;  %1024 = vmatprep.subr.bf16.mxu0 %v1540_v12  ;;  %v1569_v31 = vld [vmem:[%s2358_s1 + $0x100] ss:$8 sps:$4 sm:$0xff]   ;;  %v1572_v33 = vld [vmem:[%s2358_s1 + $0x1f4] ss:$8 sps:$4 sm:$0xff]   ;;  %v1575_v35 = vld [vmem:[%s2358_s1 + $0x1f0] ss:$8 sps:$4 sm:$0xff]  }
   0xd   :  { %1065 = vmatprep.subr.bf16.mxu1 %v1542_v13  ;;  %v1576_v36 = vld [vmem:[%s2358_s1 + $0xe4] ss:$8 sps:$4 sm:$0xff]   ;;  %v1580_v38 = vld [vmem:[%s2358_s1 + $0xe0] ss:$8 sps:$4 sm:$0xff]   ;;  %v1582_v40 = vld [vmem:[%s2358_s1 + $0xd4] ss:$8 sps:$4 sm:$0xff]  }
   0xe   :  { %v1578_v37 = vld [vmem:[%s2358_s1 + $0x1e4] ss:$8 sps:$4 sm:$0xff]   ;;  %v1581_v39 = vld [vmem:[%s2358_s1 + $0x1e0] ss:$8 sps:$4 sm:$0xff]   ;;  %v1584_v41 = vld [vmem:[%s2358_s1 + $0x1d4] ss:$8 sps:$4 sm:$0xff]  }
   0xf   :  { %1025 = vmatpush1.bf16.msra.mxu0 %v1544_v14  ;;  %v1586_v42 = vld [vmem:[%s2358_s1 + $0xd0] ss:$8 sps:$4 sm:$0xff]   ;;  %v1588_v44 = vld [vmem:[%s2358_s1 + $0xc4] ss:$8 sps:$4 sm:$0xff]   ;;  %v1592_v49 = vld [vmem:[%s2358_s1 + $0xc0] ss:$8 sps:$4 sm:$0xff]  }
  0x10   :  { %1066 = vmatpush1.bf16.msra.mxu1 %v1545_v15  ;;  %1026 = vmatprep.subr.bf16.mxu0 %v1546_v16  ;;  %v1587_v43 = vld [vmem:[%s2358_s1 + $0x1d0] ss:$8 sps:$4 sm:$0xff]   ;;  %v1590_v45 = vld [vmem:[%s2358_s1 + $0x1c4] ss:$8 sps:$4 sm:$0xff]   ;;  %v1593_v50 = vld [vmem:[%s2358_s1 + $0x1c0] ss:$8 sps:$4 sm:$0xff]  }
  0x11   :  { %1067 = vmatprep.subr.bf16.mxu1 %v1548_v17  ;;  %v18_v46 = vld [vmem:[%s2357_s0] sm:$0xff]  ;;  %v19_v48 = vld [vmem:[%s2357_s0 + $0x8] sm:$0xff]  ;;  %v1594_v52 = vld [vmem:[%s2358_s1 + $0xb4] ss:$8 sps:$4 sm:$0xff]  }
  0x12   :  { %v1351_v47 = vcombine.high %v18_v46, %v18_v46  ;;  %v1353_v51 = vcombine.high %v19_v48, %v19_v48  ;;  %v1596_v53 = vld [vmem:[%s2358_s1 + $0x1b4] ss:$8 sps:$4 sm:$0xff]   ;;  %v1598_v54 = vld [vmem:[%s2358_s1 + $0xb0] ss:$8 sps:$4 sm:$0xff]   ;;  %v1600_v56 = vld [vmem:[%s2358_s1 + $0xa4] ss:$8 sps:$4 sm:$0xff]   ;;  %v1350_v6 = vcombine.low %v18_v46, %v18_v46  ;;  %v1352_v7 = vcombine.low %v19_v48, %v19_v48 }
  0x13   :  { %1027 = vmatpush1.bf16.msra.mxu0 %v1550_v18  ;;  %v1599_v55 = vld [vmem:[%s2358_s1 + $0x1b0] ss:$8 sps:$4 sm:$0xff]   ;;  %v1602_v57 = vld [vmem:[%s2358_s1 + $0x1a4] ss:$8 sps:$4 sm:$0xff]   ;;  %v1604_v58 = vld [vmem:[%s2358_s1 + $0xa0] ss:$8 sps:$4 sm:$0xff]  }
  0x14   :  { %1068 = vmatpush1.bf16.msra.mxu1 %v1551_v19  ;;  %1028 = vmatprep.subr.bf16.mxu0 %v1552_v20  ;;  %v1605_v59 = vld [vmem:[%s2358_s1 + $0x1a0] ss:$8 sps:$4 sm:$0xff]   ;;  %v1606_v60 = vld [vmem:[%s2358_s1 + $0x94] ss:$8 sps:$4 sm:$0xff]   ;;  %v1610_v62 = vld [vmem:[%s2358_s1 + $0x90] ss:$8 sps:$4 sm:$0xff]  }
  0x15   :  { %1069 = vmatprep.subr.bf16.mxu1 %v1554_v21  ;;  %1050 = vmatprep.mubr.bf16.mxu0 %v1351_v47  ;;  %v1608_v61 = vld [vmem:[%s2358_s1 + $0x194] ss:$8 sps:$4 sm:$0xff]   ;;  %v1611_v63 = vld [vmem:[%s2358_s1 + $0x190] ss:$8 sps:$4 sm:$0xff]   ;;  %v1612_v0 = vld [vmem:[%s2358_s1 + $0x84] ss:$8 sps:$4 sm:$0xff]  }
  0x16   :  { %1091 = vmatprep.mubr.bf16.mxu1 %v1353_v51  ;;  %v1614_v1 = vld [vmem:[%s2358_s1 + $0x184] ss:$8 sps:$4 sm:$0xff]   ;;  %v1616_v2 = vld [vmem:[%s2358_s1 + $0x80] ss:$8 sps:$4 sm:$0xff]   ;;  %v1624_v4 = vld [vmem:[%s2358_s1 + $0x274] ss:$8 sps:$4 sm:$0xff]  }
  0x17   :  { %1029 = vmatpush1.bf16.msra.mxu0 %v1556_v22  ;;  %v1617_v3 = vld [vmem:[%s2358_s1 + $0x180] ss:$8 sps:$4 sm:$0xff]   ;;  %v1627_v5 = vld [vmem:[%s2358_s1 + $0x374] ss:$8 sps:$4 sm:$0xff]   ;;  %v1622_v8 = vld [vmem:[%s2358_s1 + $0x270] ss:$8 sps:$4 sm:$0xff]  }
  0x18   :  { %1070 = vmatpush1.bf16.msra.mxu1 %v1557_v23  ;;  %1030 = vmatprep.subr.bf16.mxu0 %v1558_v24  ;;  %v1625_v9 = vld [vmem:[%s2358_s1 + $0x370] ss:$8 sps:$4 sm:$0xff]   ;;  %v1630_v10 = vld [vmem:[%s2358_s1 + $0x264] ss:$8 sps:$4 sm:$0xff]   ;;  %v1628_v12 = vld [vmem:[%s2358_s1 + $0x260] ss:$8 sps:$4 sm:$0xff]  }
  0x19   :  { %1071 = vmatprep.subr.bf16.mxu1 %v1560_v25  ;;  %v1633_v11 = vld [vmem:[%s2358_s1 + $0x364] ss:$8 sps:$4 sm:$0xff]   ;;  %v1631_v13 = vld [vmem:[%s2358_s1 + $0x360] ss:$8 sps:$4 sm:$0xff]   ;;  %v1636_v14 = vld [vmem:[%s2358_s1 + $0x254] ss:$8 sps:$4 sm:$0xff]  }
  0x1a   :  { %v1639_v15 = vld [vmem:[%s2358_s1 + $0x354] ss:$8 sps:$4 sm:$0xff]   ;;  %v1634_v16 = vld [vmem:[%s2358_s1 + $0x250] ss:$8 sps:$4 sm:$0xff]   ;;  %v1642_v18 = vld [vmem:[%s2358_s1 + $0x244] ss:$8 sps:$4 sm:$0xff]  }
  0x1b   :  { %1031 = vmatpush1.bf16.msra.mxu0 %v1562_v26  ;;  %v1637_v17 = vld [vmem:[%s2358_s1 + $0x350] ss:$8 sps:$4 sm:$0xff]   ;;  %v1645_v19 = vld [vmem:[%s2358_s1 + $0x344] ss:$8 sps:$4 sm:$0xff]   ;;  %v1640_v20 = vld [vmem:[%s2358_s1 + $0x240] ss:$8 sps:$4 sm:$0xff]  }
  0x1c   :  { %1072 = vmatpush1.bf16.msra.mxu1 %v1563_v27  ;;  %1032 = vmatprep.subr.bf16.mxu0 %v1564_v28  ;;  %v1643_v21 = vld [vmem:[%s2358_s1 + $0x340] ss:$8 sps:$4 sm:$0xff]   ;;  %v1648_v22 = vld [vmem:[%s2358_s1 + $0x234] ss:$8 sps:$4 sm:$0xff]   ;;  %v1646_v24 = vld [vmem:[%s2358_s1 + $0x230] ss:$8 sps:$4 sm:$0xff]  }
  0x1d   :  { %1073 = vmatprep.subr.bf16.mxu1 %v1566_v29  ;;  %v1651_v23 = vld [vmem:[%s2358_s1 + $0x334] ss:$8 sps:$4 sm:$0xff]   ;;  %v1649_v25 = vld [vmem:[%s2358_s1 + $0x330] ss:$8 sps:$4 sm:$0xff]   ;;  %v1654_v26 = vld [vmem:[%s2358_s1 + $0x224] ss:$8 sps:$4 sm:$0xff]  }
  0x1e   :  { %v1657_v27 = vld [vmem:[%s2358_s1 + $0x324] ss:$8 sps:$4 sm:$0xff]   ;;  %v1652_v28 = vld [vmem:[%s2358_s1 + $0x220] ss:$8 sps:$4 sm:$0xff]   ;;  %v1687_v51 = vld [vmem:[%s2358_s1 + $0x3d4] ss:$8 sps:$4 sm:$0xff]  }
  0x1f   :  { %1033 = vmatpush1.bf16.msra.mxu0 %v1568_v30  ;;  %v1655_v29 = vld [vmem:[%s2358_s1 + $0x320] ss:$8 sps:$4 sm:$0xff]   ;;  %v1660_v30 = vld [vmem:[%s2358_s1 + $0x214] ss:$8 sps:$4 sm:$0xff]   ;;  %v1678_v46 = vld [vmem:[%s2358_s1 + $0x2e4] ss:$8 sps:$4 sm:$0xff]  }
  0x20   :  { %1074 = vmatpush1.bf16.msra.mxu1 %v1569_v31  ;;  %1034 = vmatprep.subr.bf16.mxu0 %v1570_v32  ;;  %v1663_v31 = vld [vmem:[%s2358_s1 + $0x314] ss:$8 sps:$4 sm:$0xff]   ;;  %v1681_v47 = vld [vmem:[%s2358_s1 + $0x3e4] ss:$8 sps:$4 sm:$0xff]   ;;  %v1676_v48 = vld [vmem:[%s2358_s1 + $0x2e0] ss:$8 sps:$4 sm:$0xff]  }
  0x21   :  { %1075 = vmatprep.subr.bf16.mxu1 %v1572_v33  ;;  %v2104_v32 = vld [vmem:[%s2357_s0 + $0x10] sm:$0xff] }
  0x22   :  { %v1658_v33 = vld [vmem:[%s2358_s1 + $0x210] ss:$8 sps:$4 sm:$0xff]  }
  0x23   :  { %1035 = vmatpush2.bf16.msra.mxu0 %v1574_v34  ;;  %v1661_v34 = vld [vmem:[%s2358_s1 + $0x310] ss:$8 sps:$4 sm:$0xff]  }
  0x24   :  { %1076 = vmatpush2.bf16.msra.mxu1 %v1575_v35  ;;  %1036 = vmatprep.subr.bf16.mxu0 %v1576_v36  ;;  %v1355_v35 = vcombine.high %v2104_v32, %v2104_v32  ;;  %v2117_v36 = vld [vmem:[%s2357_s0 + $0x18] sm:$0xff] }
  0x25   :  { %1077 = vmatprep.subr.bf16.mxu1 %v1578_v37  ;;  %v1666_v37 = vld [vmem:[%s2358_s1 + $0x204] ss:$8 sps:$4 sm:$0xff]  }
  0x27   :  { %1037 = vmatpush2.bf16.msra.mxu0 %v1580_v38  ;;  %v1357_v38 = vcombine.high %v2117_v36, %v2117_v36 }
  0x28   :  { %1078 = vmatpush2.bf16.msra.mxu1 %v1581_v39  ;;  %1038 = vmatprep.subr.bf16.mxu0 %v1582_v40  ;;  %v1669_v39 = vld [vmem:[%s2358_s1 + $0x304] ss:$8 sps:$4 sm:$0xff]   ;;  %v1664_v40 = vld [vmem:[%s2358_s1 + $0x200] ss:$8 sps:$4 sm:$0xff]  }
  0x29   :  { %1079 = vmatprep.subr.bf16.mxu1 %v1584_v41  ;;  %v1667_v41 = vld [vmem:[%s2358_s1 + $0x300] ss:$8 sps:$4 sm:$0xff]  }
  0x2b   :  { %1039 = vmatpush2.bf16.msra.mxu0 %v1586_v42  ;;  %v1672_v42 = vld [vmem:[%s2358_s1 + $0x2f4] ss:$8 sps:$4 sm:$0xff]  }
  0x2c   :  { %1080 = vmatpush2.bf16.msra.mxu1 %v1587_v43  ;;  %1040 = vmatprep.subr.bf16.mxu0 %v1588_v44  ;;  %v1675_v43 = vld [vmem:[%s2358_s1 + $0x3f4] ss:$8 sps:$4 sm:$0xff]   ;;  %v1670_v44 = vld [vmem:[%s2358_s1 + $0x2f0] ss:$8 sps:$4 sm:$0xff]  }
  0x2d   :  { %1081 = vmatprep.subr.bf16.mxu1 %v1590_v45  ;;  %v1673_v45 = vld [vmem:[%s2358_s1 + $0x3f0] ss:$8 sps:$4 sm:$0xff]  }
  0x2f   :  { %1041 = vmatpush2.bf16.msra.mxu0 %v1592_v49  ;;  %v1679_v49 = vld [vmem:[%s2358_s1 + $0x3e0] ss:$8 sps:$4 sm:$0xff]  }
  0x30   :  { %1082 = vmatpush2.bf16.msra.mxu1 %v1593_v50  ;;  %1042 = vmatprep.subr.bf16.mxu0 %v1594_v52  ;;  %v1684_v50 = vld [vmem:[%s2358_s1 + $0x2d4] ss:$8 sps:$4 sm:$0xff]   ;;  %v1682_v52 = vld [vmem:[%s2358_s1 + $0x2d0] ss:$8 sps:$4 sm:$0xff]  }
  0x31   :  { %1083 = vmatprep.subr.bf16.mxu1 %v1596_v53  ;;  %v1685_v53 = vld [vmem:[%s2358_s1 + $0x3d0] ss:$8 sps:$4 sm:$0xff]  }
  0x33   :  { %1043 = vmatpush2.bf16.msra.mxu0 %v1598_v54  ;;  %v1690_v54 = vld [vmem:[%s2358_s1 + $0x2c4] ss:$8 sps:$4 sm:$0xff]  }
  0x34   :  { %1084 = vmatpush2.bf16.msra.mxu1 %v1599_v55  ;;  %1044 = vmatprep.subr.bf16.mxu0 %v1600_v56  ;;  %v1693_v55 = vld [vmem:[%s2358_s1 + $0x3c4] ss:$8 sps:$4 sm:$0xff]   ;;  %v1688_v56 = vld [vmem:[%s2358_s1 + $0x2c0] ss:$8 sps:$4 sm:$0xff]  }
  0x35   :  { %1085 = vmatprep.subr.bf16.mxu1 %v1602_v57  ;;  %v1691_v57 = vld [vmem:[%s2358_s1 + $0x3c0] ss:$8 sps:$4 sm:$0xff]  }
  0x37   :  { %1045 = vmatpush2.bf16.msra.mxu0 %v1604_v58 }
  0x38   :  { %1086 = vmatpush2.bf16.msra.mxu1 %v1605_v59  ;;  %1046 = vmatprep.subr.bf16.mxu0 %v1606_v60 }
  0x39   :  { %1087 = vmatprep.subr.bf16.mxu1 %v1608_v61 }
  0x3b   :  { %1047 = vmatpush2.bf16.msra.mxu0 %v1610_v62 }
  0x3c   :  { %1088 = vmatpush2.bf16.msra.mxu1 %v1611_v63  ;;  %1048 = vmatprep.subr.bf16.mxu0 %v1612_v0 }
  0x3d   :  { %1089 = vmatprep.subr.bf16.mxu1 %v1614_v1 }
  0x3f   :  { %1049 = vmatpush2.bf16.msra.mxu0 %v1616_v2 }
  0x40   :  { %1090 = vmatpush2.bf16.msra.mxu1 %v1617_v3  ;;  %1100 = vmatprep.subr.bf16.mxu0 %v1624_v4 }
  0x41   :  { %1141 = vmatprep.subr.bf16.mxu1 %v1627_v5 }
  0x42   :  { %1051 = vmatmul.mubr.bf16.vlgmr.msra.gmra.mxu0 %v1350_v6 }
  0x43   :  { %1092 = vmatmul.mubr.bf16.vlgmr.msra.gmra.mxu1 %v1352_v7  ;;  %1101 = vmatpush1.bf16.msra.mxu0 %v1622_v8 }
  0x44   :  { %1142 = vmatpush1.bf16.msra.mxu1 %v1625_v9  ;;  %1102 = vmatprep.subr.bf16.mxu0 %v1630_v10 }
  0x45   :  { %1143 = vmatprep.subr.bf16.mxu1 %v1633_v11  ;;  %1132 = vmatprep.mubr.bf16.mxu0 %v1355_v35 }
  0x46   :  { %1173 = vmatprep.mubr.bf16.mxu1 %v1357_v38 }
  0x47   :  { %1103 = vmatpush1.bf16.msra.mxu0 %v1628_v12 }
  0x48   :  { %1144 = vmatpush1.bf16.msra.mxu1 %v1631_v13  ;;  %1104 = vmatprep.subr.bf16.mxu0 %v1636_v14 }
  0x49   :  { %1145 = vmatprep.subr.bf16.mxu1 %v1639_v15 }
  0x4b   :  { %1105 = vmatpush1.bf16.msra.mxu0 %v1634_v16 }
  0x4c   :  { %1146 = vmatpush1.bf16.msra.mxu1 %v1637_v17  ;;  %1106 = vmatprep.subr.bf16.mxu0 %v1642_v18 }
  0x4d   :  { %1147 = vmatprep.subr.bf16.mxu1 %v1645_v19 }
  0x4f   :  { %1107 = vmatpush1.bf16.msra.mxu0 %v1640_v20 }
  0x50   :  { %1148 = vmatpush1.bf16.msra.mxu1 %v1643_v21  ;;  %1108 = vmatprep.subr.bf16.mxu0 %v1648_v22 }
  0x51   :  { %1149 = vmatprep.subr.bf16.mxu1 %v1651_v23 }
  0x53   :  { %1109 = vmatpush1.bf16.msra.mxu0 %v1646_v24 }
  0x54   :  { %1150 = vmatpush1.bf16.msra.mxu1 %v1649_v25  ;;  %1110 = vmatprep.subr.bf16.mxu0 %v1654_v26 }
  0x55   :  { %1151 = vmatprep.subr.bf16.mxu1 %v1657_v27 }
  0x57   :  { %1111 = vmatpush1.bf16.msra.mxu0 %v1652_v28 }
  0x58   :  { %1152 = vmatpush1.bf16.msra.mxu1 %v1655_v29  ;;  %1112 = vmatprep.subr.bf16.mxu0 %v1660_v30 }
  0x59   :  { %1153 = vmatprep.subr.bf16.mxu1 %v1663_v31 }
  0x5b   :  { %1113 = vmatpush1.bf16.msra.mxu0 %v1658_v33 }
  0x5c   :  { %1154 = vmatpush1.bf16.msra.mxu1 %v1661_v34  ;;  %1114 = vmatprep.subr.bf16.mxu0 %v1666_v37 }
  0x5d   :  { %1155 = vmatprep.subr.bf16.mxu1 %v1669_v39 }
  0x5f   :  { %1115 = vmatpush1.bf16.msra.mxu0 %v1664_v40 }
  0x60   :  { %1156 = vmatpush1.bf16.msra.mxu1 %v1667_v41  ;;  %1116 = vmatprep.subr.bf16.mxu0 %v1672_v42 }
  0x61   :  { %1157 = vmatprep.subr.bf16.mxu1 %v1675_v43 }
  0x63   :  { %1117 = vmatpush2.bf16.msra.mxu0 %v1670_v44 }
  0x64   :  { %1158 = vmatpush2.bf16.msra.mxu1 %v1673_v45  ;;  %1118 = vmatprep.subr.bf16.mxu0 %v1678_v46 }
  0x65   :  { %1159 = vmatprep.subr.bf16.mxu1 %v1681_v47 }
  0x67   :  { %1119 = vmatpush2.bf16.msra.mxu0 %v1676_v48 }
  0x68   :  { %1160 = vmatpush2.bf16.msra.mxu1 %v1679_v49  ;;  %1120 = vmatprep.subr.bf16.mxu0 %v1684_v50 }
  0x69   :  { %1161 = vmatprep.subr.bf16.mxu1 %v1687_v51 }
  0x6b   :  { %1121 = vmatpush2.bf16.msra.mxu0 %v1682_v52 }
  0x6c   :  { %1162 = vmatpush2.bf16.msra.mxu1 %v1685_v53 }
  0x6d   :  { %9 = vsyncpa [#allocation3], 0  ;;  %1122 = vmatprep.subr.bf16.mxu0 %v1690_v54  ;;  %1163 = vmatprep.subr.bf16.mxu1 %v1693_v55  ;;  %v1696_v58 = vld [vmem:[%s2358_s1 + $0x2b4] ss:$8 sps:$4 sm:$0xff]   ;;  %v1694_v60 = vld [vmem:[%s2358_s1 + $0x2b0] ss:$8 sps:$4 sm:$0xff]   ;;  %v1354_v12 = vcombine.low %v2104_v32, %v2104_v32  ;;  %v1356_v13 = vcombine.low %v2117_v36, %v2117_v36 }
  0x6e   :  { %v1699_v59 = vld [vmem:[%s2358_s1 + $0x3b4] ss:$8 sps:$4 sm:$0xff]   ;;  %v1697_v61 = vld [vmem:[%s2358_s1 + $0x3b0] ss:$8 sps:$4 sm:$0xff]   ;;  %v1702_v62 = vld [vmem:[%s2358_s1 + $0x2a4] ss:$8 sps:$4 sm:$0xff]  }
  0x6f   :  { %1123 = vmatpush2.bf16.msra.mxu0 %v1688_v56  ;;  %v1705_v63 = vld [vmem:[%s2358_s1 + $0x3a4] ss:$8 sps:$4 sm:$0xff]   ;;  %v1700_v0 = vld [vmem:[%s2358_s1 + $0x2a0] ss:$8 sps:$4 sm:$0xff]   ;;  %v1708_v2 = vld [vmem:[%s2358_s1 + $0x294] ss:$8 sps:$4 sm:$0xff]  }
  0x70   :  { %1164 = vmatpush2.bf16.msra.mxu1 %v1691_v57  ;;  %1124 = vmatprep.subr.bf16.mxu0 %v1696_v58  ;;  %v1703_v1 = vld [vmem:[%s2358_s1 + $0x3a0] ss:$8 sps:$4 sm:$0xff]   ;;  %v1711_v3 = vld [vmem:[%s2358_s1 + $0x394] ss:$8 sps:$4 sm:$0xff]   ;;  %v1706_v4 = vld [vmem:[%s2358_s1 + $0x290] ss:$8 sps:$4 sm:$0xff]  }
  0x71   :  { %1165 = vmatprep.subr.bf16.mxu1 %v1699_v59  ;;  %v1709_v5 = vld [vmem:[%s2358_s1 + $0x390] ss:$8 sps:$4 sm:$0xff]   ;;  %v1714_v6 = vld [vmem:[%s2358_s1 + $0x284] ss:$8 sps:$4 sm:$0xff]   ;;  %v1712_v8 = vld [vmem:[%s2358_s1 + $0x280] ss:$8 sps:$4 sm:$0xff]  }
  0x72   :  { %v1717_v7 = vld [vmem:[%s2358_s1 + $0x384] ss:$8 sps:$4 sm:$0xff]   ;;  %v1715_v9 = vld [vmem:[%s2358_s1 + $0x380] ss:$8 sps:$4 sm:$0xff]   ;;  %v1722_v10 = vld [vmem:[%s2358_s1 + $0x474] ss:$8 sps:$4 sm:$0xff]  }
  0x73   :  { %1125 = vmatpush2.bf16.msra.mxu0 %v1694_v60  ;;  %v2235_v11 = vld [vmem:[%s2357_s0 + $0x20] sm:$0xff]  ;;  %v1720_v14 = vld [vmem:[%s2358_s1 + $0x470] ss:$8 sps:$4 sm:$0xff]   ;;  %v1730_v18 = vld [vmem:[%s2358_s1 + $0x454] ss:$8 sps:$4 sm:$0xff]   ;;  %vm1229_vm0 = vcmask 15360  }
  0x74   :  { %1166 = vmatpush2.bf16.msra.mxu1 %v1697_v61  ;;  %1126 = vmatprep.subr.bf16.mxu0 %v1702_v62  ;;  %v1359_v15 = vcombine.high %v2235_v11, %v2235_v11  ;;  %v1727_v16 = vld [vmem:[%s2358_s1 + $0x464] ss:$8 sps:$4 sm:$0xff]   ;;  %v1725_v17 = vld [vmem:[%s2358_s1 + $0x460] ss:$8 sps:$4 sm:$0xff]   ;;  %v1728_v19 = vld [vmem:[%s2358_s1 + $0x450] ss:$8 sps:$4 sm:$0xff]   ;;  %v1358_v46 = vcombine.low %v2235_v11, %v2235_v11 }
  0x75   :  { %1167 = vmatprep.subr.bf16.mxu1 %v1705_v63  ;;  %v1733_v20 = vld [vmem:[%s2358_s1 + $0x444] ss:$8 sps:$4 sm:$0xff]   ;;  %v1731_v21 = vld [vmem:[%s2358_s1 + $0x440] ss:$8 sps:$4 sm:$0xff]   ;;  %v1736_v22 = vld [vmem:[%s2358_s1 + $0x434] ss:$8 sps:$4 sm:$0xff]  }
  0x76   :  { %v1734_v23 = vld [vmem:[%s2358_s1 + $0x430] ss:$8 sps:$4 sm:$0xff]   ;;  %v1739_v24 = vld [vmem:[%s2358_s1 + $0x424] ss:$8 sps:$4 sm:$0xff]   ;;  %v1737_v25 = vld [vmem:[%s2358_s1 + $0x420] ss:$8 sps:$4 sm:$0xff]  }
  0x77   :  { %1127 = vmatpush2.bf16.msra.mxu0 %v1700_v0  ;;  %v1742_v26 = vld [vmem:[%s2358_s1 + $0x414] ss:$8 sps:$4 sm:$0xff]   ;;  %v1740_v27 = vld [vmem:[%s2358_s1 + $0x410] ss:$8 sps:$4 sm:$0xff]   ;;  %v1745_v28 = vld [vmem:[%s2358_s1 + $0x404] ss:$8 sps:$4 sm:$0xff]  }
  0x78   :  { %1168 = vmatpush2.bf16.msra.mxu1 %v1703_v1  ;;  %1128 = vmatprep.subr.bf16.mxu0 %v1708_v2  ;;  %v1743_v29 = vld [vmem:[%s2358_s1 + $0x400] ss:$8 sps:$4 sm:$0xff]   ;;  %v1748_v30 = vld [vmem:[%s2358_s1 + $0x4f4] ss:$8 sps:$4 sm:$0xff]   ;;  %v1746_v31 = vld [vmem:[%s2358_s1 + $0x4f0] ss:$8 sps:$4 sm:$0xff]  }
  0x79   :  { %1169 = vmatprep.subr.bf16.mxu1 %v1711_v3  ;;  %v1751_v32 = vld [vmem:[%s2358_s1 + $0x4e4] ss:$8 sps:$4 sm:$0xff]   ;;  %v1749_v33 = vld [vmem:[%s2358_s1 + $0x4e0] ss:$8 sps:$4 sm:$0xff]   ;;  %v1754_v34 = vld [vmem:[%s2358_s1 + $0x4d4] ss:$8 sps:$4 sm:$0xff]  }
  0x7a   :  { %v1752_v35 = vld [vmem:[%s2358_s1 + $0x4d0] ss:$8 sps:$4 sm:$0xff]   ;;  %v1757_v36 = vld [vmem:[%s2358_s1 + $0x4c4] ss:$8 sps:$4 sm:$0xff]   ;;  %v1755_v37 = vld [vmem:[%s2358_s1 + $0x4c0] ss:$8 sps:$4 sm:$0xff]  }
  0x7b   :  { %1129 = vmatpush2.bf16.msra.mxu0 %v1706_v4  ;;  %v1760_v38 = vld [vmem:[%s2358_s1 + $0x4b4] ss:$8 sps:$4 sm:$0xff]   ;;  %v1758_v39 = vld [vmem:[%s2358_s1 + $0x4b0] ss:$8 sps:$4 sm:$0xff]   ;;  %v1763_v40 = vld [vmem:[%s2358_s1 + $0x4a4] ss:$8 sps:$4 sm:$0xff]  }
  0x7c   :  { %1170 = vmatpush2.bf16.msra.mxu1 %v1709_v5  ;;  %1130 = vmatprep.subr.bf16.mxu0 %v1714_v6  ;;  %v1761_v41 = vld [vmem:[%s2358_s1 + $0x4a0] ss:$8 sps:$4 sm:$0xff]   ;;  %v1766_v42 = vld [vmem:[%s2358_s1 + $0x494] ss:$8 sps:$4 sm:$0xff]   ;;  %v1764_v43 = vld [vmem:[%s2358_s1 + $0x490] ss:$8 sps:$4 sm:$0xff]  }
  0x7d   :  { %1171 = vmatprep.subr.bf16.mxu1 %v1717_v7  ;;  %v1769_v44 = vld [vmem:[%s2358_s1 + $0x484] ss:$8 sps:$4 sm:$0xff]   ;;  %v1767_v45 = vld [vmem:[%s2358_s1 + $0x480] ss:$8 sps:$4 sm:$0xff]  }
  0x7f   :  { %1131 = vmatpush2.bf16.msra.mxu0 %v1712_v8 }
  0x80   :  { %1172 = vmatpush2.bf16.msra.mxu1 %v1715_v9  ;;  %1182 = vmatprep.subr.bf16.mxu0 %v1722_v10 }
  0x82   :  { %1133 = vmatmul.mubr.bf16.vlgmr.msra.gmra.mxu0 %v1354_v12 }
  0x83   :  { %1174 = vmatmul.mubr.bf16.vlgmr.msra.gmra.mxu1 %v1356_v13  ;;  %1183 = vmatpush1.bf16.msra.mxu0 %v1720_v14 }
  0x84   :  { %1214 = vmatprep.mubr.bf16.mxu0 %v1359_v15  ;;  %1184 = vmatprep.subr.bf16.mxu0 %v1727_v16 }
  0x87   :  { %1185 = vmatpush1.bf16.msra.mxu0 %v1725_v17 }
  0x88   :  { %1186 = vmatprep.subr.bf16.mxu0 %v1730_v18 }
  0x8b   :  { %1187 = vmatpush1.bf16.msra.mxu0 %v1728_v19 }
  0x8c   :  { %1188 = vmatprep.subr.bf16.mxu0 %v1733_v20 }
  0x8f   :  { %1189 = vmatpush1.bf16.msra.mxu0 %v1731_v21 }
  0x90   :  { %1190 = vmatprep.subr.bf16.mxu0 %v1736_v22 }
  0x93   :  { %1191 = vmatpush1.bf16.msra.mxu0 %v1734_v23 }
  0x94   :  { %1192 = vmatprep.subr.bf16.mxu0 %v1739_v24 }
  0x97   :  { %1193 = vmatpush1.bf16.msra.mxu0 %v1737_v25 }
  0x98   :  { %1194 = vmatprep.subr.bf16.mxu0 %v1742_v26 }
  0x9b   :  { %1195 = vmatpush1.bf16.msra.mxu0 %v1740_v27 }
  0x9c   :  { %1196 = vmatprep.subr.bf16.mxu0 %v1745_v28 }
  0x9f   :  { %1197 = vmatpush1.bf16.msra.mxu0 %v1743_v29 }
  0xa0   :  { %1198 = vmatprep.subr.bf16.mxu0 %v1748_v30 }
  0xa3   :  { %1199 = vmatpush2.bf16.msra.mxu0 %v1746_v31 }
  0xa4   :  { %1200 = vmatprep.subr.bf16.mxu0 %v1751_v32 }
  0xa7   :  { %1201 = vmatpush2.bf16.msra.mxu0 %v1749_v33 }
  0xa8   :  { %1202 = vmatprep.subr.bf16.mxu0 %v1754_v34 }
  0xab   :  { %1203 = vmatpush2.bf16.msra.mxu0 %v1752_v35 }
  0xac   :  { %1204 = vmatprep.subr.bf16.mxu0 %v1757_v36 }
  0xaf   :  { %1205 = vmatpush2.bf16.msra.mxu0 %v1755_v37 }
  0xb0   :  { %1206 = vmatprep.subr.bf16.mxu0 %v1760_v38 }
  0xb3   :  { %1207 = vmatpush2.bf16.msra.mxu0 %v1758_v39 }
  0xb4   :  { %1208 = vmatprep.subr.bf16.mxu0 %v1763_v40 }
  0xb7   :  { %1209 = vmatpush2.bf16.msra.mxu0 %v1761_v41 }
  0xb8   :  { %1210 = vmatprep.subr.bf16.mxu0 %v1766_v42 }
  0xbb   :  { %1211 = vmatpush2.bf16.msra.mxu0 %v1764_v43 }
  0xbc   :  { %1212 = vmatprep.subr.bf16.mxu0 %v1769_v44 }
  0xbf   :  { %1213 = vmatpush2.bf16.msra.mxu0 %v1767_v45 }
  0xc2   :  { %1215 = vmatmul.mubr.bf16.vlgmr.msra.gmra.mxu0 %v1358_v46 }
 0x102   :  { %v1052_v47 = vpop.f32.mrf.mxu0 }
 0x103   :  { %v1093_v48 = vpop.f32.mrf.mxu1 }
 0x104   :  { %v1094_v49 = vadd.f32 %v1093_v48, %v1052_v47  ;;  %v1054_v50 = vpop.f32.mrf.mxu0 }
 0x105   :  { %v1095_v51 = vpop.f32.mrf.mxu1 }
 0x106   :  { %v1096_v52 = vadd.f32 %v1095_v51, %v1054_v50  ;;  %v1056_v53 = vpop.f32.mrf.mxu0  ;;  %v1271_v51 = vlaneseq }
 0x107   :  { %v1097_v54 = vpop.f32.mrf.mxu1 }
 0x108   :  { %v1057_v55 = vpop.f32.mrf.mxu0  ;;  %v1272_v53 = vshrl.u32 %v1271_v51, 7 }
 0x109   :  { %v1098_v56 = vpop.f32.mrf.mxu1 }
 0x142   :  { %v1134_v57 = vpop.f32.mrf.mxu0 }
 0x143   :  { %v1175_v58 = vpop.f32.mrf.mxu1  ;;  %v1135_v59 = vadd.f32 %v1134_v57, %v1094_v49  ;;  %v1798_v49 = vmov 1966171168  }
 0x144   :  { %v1136_v60 = vpop.f32.mrf.mxu0  ;;  %v1269_v50 = vunpack.c.l.s4 %v1798_v49 }
 0x145   :  { %v1177_v61 = vpop.f32.mrf.mxu1  ;;  %v1176_v62 = vadd.f32 %v1175_v58, %v1135_v59  ;;  %v1137_v3 = vadd.f32 %v1136_v60, %v1096_v52  ;;  %v1264_v59 = vld [vmem:[%s2359_s2] sm:$0x3]  ;;  %s1799_s2 = smov [#allocation2]  }
 0x146   :  { %v1138_v63 = vpop.f32.mrf.mxu0  ;;  %v1270_v52 = vunpack.c.0.s8 %v1269_v50  ;;  %s1342_s7 = sshll.u32 %s1799_s2, 4  ;;  %s1343_s7 = int_to_ptr.vmem [resolvable:$true] %s1342_s7 }
 0x147   :  { %v1179_v0 = vpop.f32.mrf.mxu1  ;;  %v1178_v5 = vadd.f32 %v1177_v61, %v1137_v3  ;;  %v1292_v61 = vsub.s32 1, %v1272_v53  ;;  %s1776_s8 = scalar_lea.vmem %s1343_s7, 256  ;;  %p1781_p1 = scmp.lt.s32.totalorder %s1343_s7, %s1343_s7 }
 0x148   :  { %v1139_v1 = vpop.f32.mrf.mxu0  ;;  %v1273_v55 = vsub.s32 %v1270_v52, %v1272_v53  ;;  %p1777_p0 = scmp.ne.s32.totalorder %s1343_s7, %s1776_s8  ;;  %p1782_p2 = scmp.lt.s32.totalorder %s1776_s8, %s1776_s8 }
 0x149   :  { %v1180_v2 = vpop.f32.mrf.mxu1 }
 0x14a   :  { %p1783_p3 = por %p1782_p2, %p1781_p1 }
 0x14c   :  { %p1784_p4 = pnand %p1783_p3, %p1777_p0 }
 0x182   :  { %v1216_v4 = vpop.f32.mrf.mxu0 }
 0x183   :  { %v2338_v6 = vadd.f32 %v1216_v4, %v1176_v62  ;;  %v1288_v62 = vsub.s32 0, %v1272_v53 }
 0x184   :  { %v1218_v7 = vpop.f32.mrf.mxu0 }
 0x185   :  { %v1223_v8 = vrot.slane %v2338_v6, 4  ;;  %v1237_v9 = vmul.f32 %v2338_v6, %v2338_v6  ;;  %v1219_v10 = vadd.f32 %v1218_v7, %v1178_v5 }
 0x186   :  { %v1220_v11 = vpop.f32.mrf.mxu0 }
 0x187   :  { %v1224_v12 = vadd.f32 %v1223_v8, %v2338_v6  ;;  %v1239_v13 = vrot.slane %v1237_v9, 4  ;;  %v1230_v14 = vsel %vm1229_vm0, %v1219_v10, 0.0  ;;  %v1238_v15 = vmul.f32 %v1219_v10, %v1219_v10 }
 0x188   :  { %v1231_v16 = vrot.slane %v1230_v14, 4  ;;  %v1221_v17 = vpop.f32.mrf.mxu0 }
 0x189   :  { %v1225_v18 = vrot.slane %v1224_v12, 2  ;;  %v1240_v19 = vadd.f32 %v1239_v13, %v1237_v9  ;;  %v1245_v20 = vsel %vm1229_vm0, %v1238_v15, 0.0  ;;  %v1284_v9 = vld [vmem:[%s2360_s3] sm:$0x3] }
 0x18a   :  { %v1232_v21 = vadd.f32 %v1231_v16, %v1230_v14  ;;  %v1246_v22 = vrot.slane %v1245_v20, 4 }
 0x18b   :  { %v1226_v23 = vadd.f32 %v1225_v18, %v1224_v12  ;;  %v1241_v24 = vrot.slane %v1240_v19, 2 }
 0x18c   :  { %v1233_v25 = vrot.slane %v1232_v21, 2  ;;  %v1247_v26 = vadd.f32 %v1246_v22, %v1245_v20 }
 0x18d   :  { %v1227_v27 = vrot.slane %v1226_v23, 1  ;;  %v1242_v28 = vadd.f32 %v1241_v24, %v1240_v19 }
 0x18e   :  { %v1234_v29 = vadd.f32 %v1233_v25, %v1232_v21  ;;  %v1248_v30 = vrot.slane %v1247_v26, 2 }
 0x18f   :  { %v1228_v31 = vadd.f32 %v1227_v27, %v1226_v23  ;;  %v1243_v32 = vrot.slane %v1242_v28, 1 }
 0x190   :  { %v1235_v33 = vrot.slane %v1234_v29, 1  ;;  %v1249_v34 = vadd.f32 %v1248_v30, %v1247_v26 }
 0x191   :  { %v1244_v35 = vadd.f32 %v1243_v32, %v1242_v28  ;;  %v1252_v36 = vmul.f32 0.125, %v1228_v31 }
 0x192   :  { %v1236_v37 = vadd.f32 %v1235_v33, %v1234_v29  ;;  %v1250_v38 = vrot.slane %v1249_v34, 1 }
 0x193   :  { %v1254_v39 = vmul.f32 0.125, %v1244_v35  ;;  %v1256_v40 = vmul.f32 %v1252_v36, %v1252_v36 }
 0x194   :  { %v1251_v41 = vadd.f32 %v1250_v38, %v1249_v34  ;;  %v1253_v42 = vmul.f32 0.125, %v1236_v37 }
 0x195   :  { %v1258_v43 = vsub.f32 %v1254_v39, %v1256_v40 }
 0x196   :  { %v1255_v44 = vmul.f32 0.125, %v1251_v41  ;;  %v1257_v45 = vmul.f32 %v1253_v42, %v1253_v42 }
 0x197   :  { %v1260_v46 = vadd.f32 1e-05, %v1258_v43 }
 0x198   :  { %v1259_v47 = vsub.f32 %v1255_v44, %v1257_v45 }
 0x199   :  { %1772 = vrsqrt.f32 %v1260_v46 }
 0x19a   :  { %v1261_v48 = vadd.f32 1e-05, %v1259_v47 }
 0x19c   :  { %1774 = vrsqrt.f32 %v1261_v48 }
 0x1a6   :  { %v1773_v54 = vpop.eup %1772 }
 0x1a9   :  { %v1775_v56 = vpop.eup %1774 }
 0x1aa   :  { %v1267_v57 = vcombine.low %v1773_v54, %v1775_v56 }
 0x1ac   :  { %v1274_v58 = vrot.slane %v1267_v57, %v1273_v55 }
 0x1ae   :  { %v1281_v60 = vrot.slane %v1274_v58, %v1273_v55 }
 0x1b0   :  { %v1283_v63 = vmul.f32 %v1281_v60, %v1264_v59 }
 0x1b2   :  { %v1293_v0 = vrot.slane %v1283_v63, %v1292_v61  ;;  %v1289_v1 = vrot.slane %v1283_v63, %v1288_v62 }
 0x1b4   :  { %v1297_v2 = vmul.f32 %v1293_v0, %v1253_v42  ;;  %v1318_v3 = vmul.f32 %v1293_v0, %v1219_v10  ;;  %v1296_v4 = vmul.f32 %v1289_v1, %v1252_v36  ;;  %v1317_v5 = vmul.f32 %v1289_v1, %v2338_v6 }
 0x1b6   :  { %v1300_v7 = vcombine.low %v1296_v4, %v1297_v2 }
 0x1b8   :  { %v1307_v8 = vrot.slane %v1300_v7, %v1273_v55 }
 0x1ba   :  { %v1314_v11 = vrot.slane %v1307_v8, %v1273_v55 }
 0x1bc   :  { %v1316_v12 = vsub.f32 %v1284_v9, %v1314_v11 }
 0x1be   :  { %v1323_v13 = vrot.slane %v1316_v12, %v1288_v62  ;;  %v1327_v14 = vrot.slane %v1316_v12, %v1292_v61 }
 0x1c0   :  { %v1330_v15 = vadd.f32 %v1323_v13, %v1317_v5  ;;  %v1331_v16 = vadd.f32 %v1327_v14, %v1318_v3 }
 0x1c2   :  { %v1332_v17 = vmax.f32 %v1330_v15, 0.0  ;;  %v1333_v18 = vmax.f32 %v1331_v16, 0.0 }
 0x1c4   :  { %1334 = vst [vmem:[#allocation2] sm:$0xff] %v1332_v17  ;;  %1335 = vst.msk [vmem:[#allocation2 + $0x8] sm:$0xff] %vm1229_vm0, %v1333_v18 }
 0x1c5   :  { %1787 = shalt.err (!%p1784_p4)
}
 0x1c6   :  { %1345 = dma.vmem_to_hbm [thread:$0]  %s1343_s7, 256, %s2361_s4, [#allocation3]  }
 0x1c7   :  { %1796 = dma.done.wait [#allocation3], 256  }
 0x1c8   :  { %1797 = vsyncadd [#allocation3], 4294967040 }
 0x1c9   :  { %1349 = vsyncpa [#allocation3], 1 }

</bundles_post_ra>
